<compile_context>
chip_gen: v5e
topology: v5e:2x2
jax: 0.10.0
libtpu: 0.0.40
codegen_flags: <defaults>
</compile_context>

<pallas_src>
import jax
import jax.numpy as jnp
from jax import lax
from jax.experimental import pallas as pl
from jax.experimental.pallas import tpu as pltpu


_VMEM_BUDGET_BYTES = 24 * 1024 * 1024   # conservative: safe within v7x 64 MiB physical
_VMEM_LIMIT_CAP = 48 * 1024 * 1024      # explicit scoped-VMEM cap passed to Mosaic
_MAX_BATCH_TILE = 512


def _round_up(x, m):
    return (x + m - 1) // m * m


def _tile_bytes(rows, cols, itemsize):
    """VMEM bytes of one buffer, including (sublane, 128)-lane layout padding."""
    sub = max(8, 32 // itemsize)
    return _round_up(max(rows, 1), sub) * _round_up(max(cols, 1), 128) * itemsize


def _pick_batch_tile(batch, input_size, n_pad, x_itemsize, w_itemsize, sublane):
    """Largest batch tile (multiple of `sublane`) fitting the VMEM budget.

    Returns (tile_rows, footprint_bytes).
    """
    cap = _MAX_BATCH_TILE
    if batch > 64:
        # v7x megacore: keep >= 2 grid steps so the second TensorCore has work.
        cap = min(cap, _round_up(pl.cdiv(batch, 2), sublane))
    tb = min(_round_up(batch, sublane), _round_up(cap, sublane))

    def footprint(t):
        return (2 * _tile_bytes(t, input_size, x_itemsize)    # x tile (double-buffered)
                + 2 * _tile_bytes(t, 1, 4)                    # label tile
                + 2 * _tile_bytes(t, n_pad, 4)                # logits / nll tile
                + _tile_bytes(input_size, n_pad, w_itemsize)  # resident W^T
                + _tile_bytes(1, n_pad, 4))                   # resident bias

    while tb > sublane and footprint(tb) > _VMEM_BUDGET_BYTES:
        tb = _round_up(max(tb // 2, sublane), sublane)
    return tb, footprint(tb)


def _vmem_limit(footprint_bytes):
    # Explicit limit so the tile budget holds on v5e (16 MiB default scoped VMEM)
    # as well as v6e/v7x; generous headroom for pipeline bookkeeping, capped well
    # below v7x's 64 MiB physical VMEM.
    return int(min(_VMEM_LIMIT_CAP, max(2 * footprint_bytes, 16 * 1024 * 1024)))


def _linear_kernel(x_ref, wt_ref, b_ref, o_ref):
    # logits = x @ W^T + b.  W arrives pre-transposed as (K, Npad), so the MXU
    # consumes its native (M,K)@(K,N) feed; accumulation in f32.
    acc = jnp.dot(x_ref[...], wt_ref[...], preferred_element_type=jnp.float32)
    o_ref[...] = (acc + b_ref[...]).astype(o_ref.dtype)


def _linear_ce_kernel(x_ref, wt_ref, b_ref, y_ref, nll_ref):
    logits = jnp.dot(x_ref[...], wt_ref[...],
                     preferred_element_type=jnp.float32) + b_ref[...]
    # Padded class columns carry a -1e30 bias: they vanish from the logsumexp
    # and can never be selected by an in-range label.
    m = jnp.max(logits, axis=-1, keepdims=True)
    lse = jnp.log(jnp.sum(jnp.exp(logits - m), axis=-1, keepdims=True)) + m
    cls = lax.broadcasted_iota(jnp.int32, logits.shape, 1)
    picked = jnp.sum(jnp.where(cls == y_ref[...], logits, 0.0),
                     axis=-1, keepdims=True)
    nll_ref[...] = lse - picked          # per-row NLL; mean happens in the wrapper


def sentiment_forward(x, w, b, y=None):
    """Reproduces SentimentAnalysisModel.forward.

    x: (batch, input_size)         f32 or bf16 (fed to the MXU as-is)
    w: (num_classes, input_size)   PyTorch nn.Linear weight layout
    b: (num_classes,)
    y: optional (batch,) int class indices
    Returns logits (batch, num_classes) if y is None, else scalar mean CE loss.
    """
    batch, input_size = x.shape
    num_classes = w.shape[0]
    n_pad = _round_up(num_classes, 128)          # lane-dense class dimension

    # One-time resident-operand prep (tiny): pad classes to Npad, pre-transpose
    # W to (K, Npad).  Padded bias columns are -1e30 (ignored by CE logsumexp,
    # sliced away on the inference path).
    w_t = jnp.pad(w, ((0, n_pad - num_classes), (0, 0))).T          # (K, Npad)
    b_pad = jnp.full((1, n_pad), -1e30, jnp.float32)
    b_pad = b_pad.at[0, :num_classes].set(b.astype(jnp.float32))

    sublane = max(8, 32 // x.dtype.itemsize)     # 8 for f32, 16 for bf16
    tb, footprint = _pick_batch_tile(batch, input_size, n_pad,
                                     x.dtype.itemsize, w_t.dtype.itemsize,
                                     sublane)
    nb = pl.cdiv(batch, tb)                      # ragged last block, no jnp.pad of x

    x_spec = pl.BlockSpec((tb, input_size), lambda i: (i, 0))
    w_spec = pl.BlockSpec((input_size, n_pad), lambda i: (0, 0))     # resident
    b_spec = pl.BlockSpec((1, n_pad), lambda i: (0, 0))              # resident

    compiler_params = pltpu.CompilerParams(
        dimension_semantics=("parallel",),
        vmem_limit_bytes=_vmem_limit(footprint))

    matmul_flops = 2 * batch * input_size * n_pad
    base_bytes = (x.dtype.itemsize * batch * input_size
                  + w_t.dtype.itemsize * input_size * n_pad
                  + 4 * n_pad)

    if y is None:
        logits = pl.pallas_call(
            _linear_kernel,
            out_shape=jax.ShapeDtypeStruct((batch, n_pad), x.dtype),
            grid=(nb,),
            in_specs=[x_spec, w_spec, b_spec],
            out_specs=pl.BlockSpec((tb, n_pad), lambda i: (i, 0)),
            compiler_params=compiler_params,
            cost_estimate=pl.CostEstimate(
                flops=matmul_flops,
                transcendentals=0,
                bytes_accessed=base_bytes + x.dtype.itemsize * batch * n_pad),
        )(x, w_t, b_pad)
        return logits[:, :num_classes]

    # Training path: fused linear + per-row NLL (integer labels, in-kernel
    # iota/compare pick); tiny mean reduction done outside to keep the grid
    # fully parallel (no resident accumulator, no pl.when).
    y2 = jnp.asarray(y, jnp.int32).reshape(batch, 1)
    y_spec = pl.BlockSpec((tb, 1), lambda i: (i, 0))

    nll = pl.pallas_call(
        _linear_ce_kernel,
        out_shape=jax.ShapeDtypeStruct((batch, 1), jnp.float32),
        grid=(nb,),
        in_specs=[x_spec, w_spec, b_spec, y_spec],
        out_specs=pl.BlockSpec((tb, 1), lambda i: (i, 0)),
        compiler_params=compiler_params,
        cost_estimate=pl.CostEstimate(
            flops=matmul_flops + 6 * batch * n_pad,
            transcendentals=batch * (n_pad + 1),   # exp per element + log per row
            bytes_accessed=base_bytes + 4 * batch + 4 * batch),
    )(x, w_t, b_pad, y2)
    return jnp.sum(nll) / batch


if __name__ == "__main__":
    batch, input_size, num_classes = 8, 32, 8

    key = jax.random.PRNGKey(0)
    kx, kw, kb, ky = jax.random.split(key, 4)

    # Deterministic synthetic parameters (nn.Linear-style uniform init).
    bound = 1.0 / (input_size ** 0.5)
    w = jax.random.uniform(kw, (num_classes, input_size), jnp.float32, -bound, bound)
    b = jax.random.uniform(kb, (num_classes,), jnp.float32, -bound, bound)

    x = jax.random.normal(kx, (batch, input_size), jnp.float32)
    y = jax.random.randint(ky, (batch,), 0, num_classes, jnp.int32)

    # Inference path: returns logits.
    logits = jax.block_until_ready(sentiment_forward(x, w, b))

    # Training path: returns mean cross-entropy loss.
    loss = jax.block_until_ready(sentiment_forward(x, w, b, y))

    # Sanity check against plain-JAX reference.
    ref_logits = x @ w.T + b
    ref_lse = jax.nn.logsumexp(ref_logits, axis=-1)
    ref_loss = jnp.mean(ref_lse - ref_logits[jnp.arange(batch), y])
    assert jnp.allclose(logits, ref_logits, atol=1e-5), "logits mismatch"
    assert jnp.allclose(loss, ref_loss, atol=1e-5), "loss mismatch"

    print("KERNEL_OK")
</pallas_src>

<mosaic_0001>
module attributes {stable_mosaic.version = 11 : i64} {
  func.func @_linear_kernel(%arg0: i32, %arg1: memref<8x32xf32, #tpu.memory_space<vmem>>, %arg2: memref<32x128xf32, #tpu.memory_space<vmem>>, %arg3: memref<1x128xf32, #tpu.memory_space<vmem>>, %arg4: memref<8x128xf32, #tpu.memory_space<vmem>>) attributes {dimension_semantics = [#tpu.dimension_semantics<parallel>], iteration_bounds = array<i64: 1>, scalar_prefetch = 0 : i64, scratch_operands = 0 : i64, tpu.core_type = #tpu.core_type<tc>, window_params = [{transform_indices = @transform_0, window_bounds = array<i64: 8, 32>}, {pipeline_mode = #tpu.pipeline_mode<synchronous>, transform_indices = @transform_1, window_bounds = array<i64: 32, 128>}, {pipeline_mode = #tpu.pipeline_mode<synchronous>, transform_indices = @transform_2, window_bounds = array<i64: 1, 128>}, {transform_indices = @transform_3, window_bounds = array<i64: 8, 128>}]} {
    %c0 = arith.constant 0 : index
    %c0_0 = arith.constant 0 : index
    %0 = vector.load %arg1[%c0, %c0_0] : memref<8x32xf32, #tpu.memory_space<vmem>>, vector<8x32xf32>
    %c0_1 = arith.constant 0 : index
    %c0_2 = arith.constant 0 : index
    %1 = vector.load %arg2[%c0_1, %c0_2] : memref<32x128xf32, #tpu.memory_space<vmem>>, vector<32x128xf32>
    %cst = arith.constant dense<0.000000e+00> : vector<8x128xf32>
    %2 = tpu.matmul %0, %1, %cst {dimension_numbers = #tpu.dot_dimension_numbers<[1], [0], [0], [1], [0, 0, 1, 1], [], []>} : vector<8x32xf32>, vector<32x128xf32>, vector<8x128xf32> -> vector<8x128xf32>
    %c0_3 = arith.constant 0 : index
    %c0_4 = arith.constant 0 : index
    %3 = vector.load %arg3[%c0_3, %c0_4] : memref<1x128xf32, #tpu.memory_space<vmem>>, vector<1x128xf32>
    %4 = vector.broadcast %3 : vector<1x128xf32> to vector<8x128xf32>
    %5 = arith.addf %2, %4 : vector<8x128xf32>
    %c0_5 = arith.constant 0 : index
    %c0_6 = arith.constant 0 : index
    %6 = vector.load %arg4[%c0_5, %c0_6] : memref<8x128xf32, #tpu.memory_space<vmem>>, vector<8x128xf32>
    tpu.vector_store %arg4[%c0_5, %c0_6], %5 {strides = array<i32>} : memref<8x128xf32, #tpu.memory_space<vmem>>, vector<8x128xf32>,
    return
  }
  func.func @transform_0(%arg0: i32) -> (i32, i32) {
    %c0_i32 = arith.constant 0 : i32
    %c0_i32_0 = arith.constant 0 : i32
    return %arg0, %c0_i32 : i32, i32
  }
  func.func @transform_1(%arg0: i32) -> (i32, i32) {
    %c0_i32 = arith.constant 0 : i32
    %c0_i32_0 = arith.constant 0 : i32
    %c0_i32_1 = arith.constant 0 : i32
    return %c0_i32, %c0_i32_0 : i32, i32
  }
  func.func @transform_2(%arg0: i32) -> (i32, i32) {
    %c0_i32 = arith.constant 0 : i32
    %c0_i32_0 = arith.constant 0 : i32
    %c0_i32_1 = arith.constant 0 : i32
    return %c0_i32, %c0_i32_0 : i32, i32
  }
  func.func @transform_3(%arg0: i32) -> (i32, i32) {
    %c0_i32 = arith.constant 0 : i32
    %c0_i32_0 = arith.constant 0 : i32
    return %arg0, %c0_i32 : i32, i32
  }
}

</mosaic_0001>

<bundles_post_ra>
// kernel: tpu_custom_call.1
= control target key start
LH: loop header
LB: loop body
LE: loop exit
PB: predicated region body
PF: predicated region fallthrough
CT: control target
= control target key end

     0   :  { %8 = vsyncpa [#allocation3], 0  ;;  %s219_s0 = inlined_call_operand.hbm [shape: f32[8,32], index: 0, kind: input, shape index: {}]   ;;  %s220_s1 = inlined_call_operand.hbm [shape: f32[32,128], index: 1, kind: input, shape index: {}]   ;;  %s221_s2 = inlined_call_operand.vmem [shape: f32[1,128], index: 2, kind: input, shape index: {}]   ;;  %s222_s3 = inlined_call_operand.hbm [shape: f32[8,128], index: 3, kind: output, shape index: {}]  }
   0x1   :  { %9 = vsyncpa [#allocation6], 0 }
   0x2   :  { %10 = vsyncpa [#allocation4], 0  ;;  %s16_s14 = sshll.u32 %s219_s0, 4  ;;  %s182_s15 = smov [#allocation2]   ;;  %s17_s14 = int_to_ptr.hbm [resolvable:$true] %s16_s14 }
   0x3   :  { %s18_s16 = sshll.u32 %s182_s15, 4  ;;  %s26_s19 = sshll.u32 %s220_s1, 4  ;;  %s19_s16 = int_to_ptr.vmem [resolvable:$true] %s18_s16  ;;  %s27_s19 = int_to_ptr.hbm [resolvable:$true] %s26_s19 }
   0x4   :  { %21 = dma.hbm_to_vmem [thread:$0]  %s17_s14, 128, %s19_s16, [#allocation3]  }
   0x5   :  { %s183_s20 = smov [#allocation5]   ;;  %s184_s22 = smov 128  }
   0x6   :  { %s28_s21 = sshll.u32 %s183_s20, 4  ;;  %s185_s23 = smov 8   ;;  %s29_s21 = int_to_ptr.vmem [resolvable:$true] %s28_s21 }
   0x7   :  { %34 = dma.hbm_to_vmem [thread:$0]  %s27_s19, 512, %s29_s21, [#allocation6], %s184_s22, %s184_s22, %s185_s23  }
   0x8   :  { %176 = dma.done.wait [#allocation3], 128  }
   0x9   :  { %177 = vsyncadd [#allocation3], 4294967168 }
   0xa   :  { %178 = dma.done.wait [#allocation6], 512  }
   0xb   :  { %179 = vsyncadd [#allocation6], 4294966784  ;;  %v49_v0 = vld [vmem:[#allocation5 + $0x18] sm:$0xff]  ;;  %v48_v1 = vld [vmem:[#allocation5 + $0x10] sm:$0xff]  ;;  %vm54_vm0 = vcmask 261120   ;;  %s186_s24 = smov [#allocation7]  }
   0xc   :  { %70 = vmatpush.msra.mxu0 %v49_v0  ;;  %v47_v2 = vld [vmem:[#allocation5 + $0x8] sm:$0xff]  ;;  %v46_v3 = vld [vmem:[#allocation5] sm:$0xff]  ;;  %v45_v4 = vld [vmem:[#allocation2] sm:$0xff]  ;;  %s84_s25 = sshll.u32 %s186_s24, 4  ;;  %s86_s28 = sshll.u32 %s222_s3, 4  ;;  %s85_s25 = int_to_ptr.vmem [resolvable:$true] %s84_s25  ;;  %s87_s28 = int_to_ptr.hbm [resolvable:$true] %s86_s28 }
   0xd   :  { %v103_v5 = vld [vmem:[%s221_s2] ss:$0 sm:$0xff] }
   0xe   :  { %71 = vmatpush.msra.mxu0 %v48_v1 }
  0x10   :  { %72 = vmatpush.msra.mxu0 %v47_v2 }
  0x12   :  { %73 = vmatpush.msra.mxu0 %v46_v3 }
  0x13   :  { %97 = vmatmul.msk.f32.vlgmr.msra.gmra.mxu0 %vm54_vm0, %v45_v4 }
  0x90   :  { %v75_v6 = vpop.f32.mrf.mxu0 }
  0x91   :  { %v76_v7 = vadd.f32 %v103_v5, %v75_v6 }
  0x93   :  { %78 = vst [vmem:[#allocation7] sm:$0xff] %v76_v7 }
  0x94   :  { %89 = dma.vmem_to_hbm [thread:$0]  %s85_s25, 128, %s87_s28, [#allocation4]  }
  0x95   :  { %180 = dma.done.wait [#allocation4], 128  }
  0x96   :  { %181 = vsyncadd [#allocation4], 4294967168 }
  0x97   :  { %94 = vsyncpa [#allocation3], 1 }
  0x98   :  { %95 = vsyncpa [#allocation6], 1 }
  0x99   :  { %96 = vsyncpa [#allocation4], 1 }

</bundles_post_ra>
